<compile_context>
chip_gen: v7x
topology: tpu7x:2x2x1
jax: 0.10.0
libtpu: 0.0.40
codegen_flags: <defaults>
</compile_context>

<pallas_src>
import functools

import jax
import jax.numpy as jnp
from jax import lax
from jax.experimental import pallas as pl
from jax.experimental.pallas import tpu as pltpu


def _round_up(v, m):
    return (v + m - 1) // m * m


# ---------------------------------------------------------------------------
# Fused MoE SwiGLU expert kernel.
#   grid = (token_tiles, num_experts, hidden_chunks); expert and hidden axes
#   are in-register reductions ("arbitrary"), token axis is "parallel".
#   per step (when the expert is active for this token tile):
#       h12 = x @ [W1|W2]_chunk          (bf16 MXU, f32 acc)
#       a   = h1 * silu(h2)              (f32 VPU/EUP)
#       acc += gate[:, e] * (a @ W3_chunk)
# ---------------------------------------------------------------------------
def _moe_expert_kernel(mask_ref, g_ref, x_ref, w12_ref, w3_ref, o_ref, acc_ref,
                       *, th):
    m = pl.program_id(0)
    e = pl.program_id(1)
    h = pl.program_id(2)

    @pl.when(jnp.logical_and(e == 0, h == 0))
    def _():
        acc_ref[...] = jnp.zeros_like(acc_ref)

    # Skip all FLOPs for experts no token in this tile routed to (top-k sparsity).
    @pl.when(mask_ref[m, e] != 0)
    def _():
        x = x_ref[...]                                               # (tm, Dp) bf16
        # One matmul for both SwiGLU branches (W1|W2 interleaved per H chunk).
        h12 = jnp.dot(x, w12_ref[0], preferred_element_type=jnp.float32)  # (tm, 2*th)
        h1 = h12[:, :th]
        h2 = h12[:, th:]
        a = h1 * (h2 * jax.nn.sigmoid(h2))                           # f32 (v5e-safe)
        y = jnp.dot(a.astype(x.dtype), w3_ref[0],
                    preferred_element_type=jnp.float32)              # (tm, Dp) f32
        acc_ref[...] += g_ref[0] * y                                 # g: (tm, 1) f32

    @pl.when(jnp.logical_and(e == pl.num_programs(1) - 1,
                             h == pl.num_programs(2) - 1))
    def _():
        o_ref[...] = acc_ref[...].astype(o_ref.dtype)


# ---------------------------------------------------------------------------
# VMEM footprint estimate for one grid step (double-buffered inputs/outputs,
# f32 accumulator, rough headroom for the h12/a intermediates).
# ---------------------------------------------------------------------------
def _expert_vmem_bytes(tm, th, dp, cdt_bytes):
    byt = 0
    byt += 2 * tm * dp * cdt_bytes            # x tile
    byt += 2 * dp * (2 * th) * cdt_bytes      # fused W1|W2 tile
    byt += 2 * th * dp * cdt_bytes            # W3 tile
    byt += 2 * tm * dp * 4                    # output tile (f32)
    byt += tm * dp * 4                        # f32 accumulator scratch
    byt += tm * (2 * th) * 4 + tm * th * 4    # h12 / swiglu intermediates
    byt += 2 * tm * 4                         # per-expert gate column
    return byt


_TH_CANDIDATES = (1024, 512, 256, 128)


# ---------------------------------------------------------------------------
# One-time weight preparation (outside the hot path): pad to lane-dense shapes,
# cast to the bf16 compute dtype, interleave W1/W2 per hidden chunk.
# ---------------------------------------------------------------------------
def prepare_moe_params(params, *, compute_dtype=jnp.bfloat16,
                       vmem_budget_bytes=32 * 1024 * 1024,
                       tm_max=512, th_max=1024):
    wg = params["wg"]
    w1, w2, w3 = params["w1"], params["w2"], params["w3"]
    e_num, d, h = w1.shape
    cdt_bytes = jnp.dtype(compute_dtype).itemsize

    dp = _round_up(d, 128)
    hp0 = _round_up(h, 128)

    # Hidden-dim tile: largest 128-multiple candidate that keeps the per-step
    # tiles inside the VMEM budget at a reference token tile of 256.
    th = 128
    for cand in _TH_CANDIDATES:
        if cand > th_max or cand > max(hp0, 128):
            continue
        if _expert_vmem_bytes(min(tm_max, 256), cand, dp,
                              cdt_bytes) <= vmem_budget_bytes * 3 // 4:
            th = min(cand, hp0)
            break
    th = max(128, th)
    hp = _round_up(hp0, th)
    n_hc = hp // th

    w1p = jnp.pad(w1, ((0, 0), (0, dp - d), (0, hp - h)))
    w2p = jnp.pad(w2, ((0, 0), (0, dp - d), (0, hp - h)))
    w3p = jnp.pad(w3, ((0, 0), (0, hp - h), (0, dp - d)))

    # Interleave W1/W2 per hidden chunk -> each grid step issues ONE weight DMA
    # and ONE (tm, Dp) x (Dp, 2*th) matmul covering both SwiGLU branches.
    w1r = w1p.reshape(e_num, dp, n_hc, th)
    w2r = w2p.reshape(e_num, dp, n_hc, th)
    w12 = jnp.concatenate([w1r, w2r], axis=3).reshape(e_num, dp, n_hc * 2 * th)

    return {
        "wg": wg,
        "w12": w12.astype(compute_dtype),
        "w3": w3p.astype(compute_dtype),
        "meta": dict(e_num=e_num, d=d, h=h, dp=dp, hp=hp, th=th, n_hc=n_hc,
                     compute_dtype=compute_dtype, tm_max=tm_max,
                     vmem_budget_bytes=vmem_budget_bytes),
    }


# ---------------------------------------------------------------------------
# Expert-mixture forward: Pallas kernel call.
# ---------------------------------------------------------------------------
def moe_experts(x2d, combine, prepared):
    meta = prepared["meta"]
    dp, th, n_hc = meta["dp"], meta["th"], meta["n_hc"]
    e_num = meta["e_num"]
    cdt = meta["compute_dtype"]
    cdt_bytes = jnp.dtype(cdt).itemsize
    budget = meta["vmem_budget_bytes"]

    n, d = x2d.shape
    out_dtype = x2d.dtype

    # ---- token tile: as large as the VMEM budget allows (amortizes the
    # per-step weight DMA); keep >= 2 tiles so both v7x TensorCores get work.
    n8 = _round_up(n, 8)
    tm = min(meta["tm_max"], n8)
    while tm > 8 and _expert_vmem_bytes(tm, th, dp, cdt_bytes) > budget * 3 // 4:
        tm = _round_up(tm // 2, 8)
    if n8 // tm < 2 and n8 >= 16:
        tm = max(8, _round_up(n8 // 2, 8))
    n_pad = _round_up(n8, tm)
    n_tiles = n_pad // tm

    # ---- activation / routing tensors (small copies; weights prepped once).
    xp = jnp.pad(x2d, ((0, n_pad - n), (0, dp - d))).astype(cdt)
    comb = jnp.pad(combine.astype(jnp.float32), ((0, n_pad - n), (0, 0)))
    # expert-major gate columns: (E, N, 1); the BlockSpec index_map picks the
    # e-th column -> no iota/where/cross-lane reduce inside the kernel.
    gate_t = comb.T.reshape(e_num, n_pad, 1)
    # per-(token tile, expert) activity mask -> scalar prefetch (SMEM).
    mask = (jnp.max(comb.reshape(n_tiles, tm, e_num), axis=1) > 0.0
            ).astype(jnp.int32)

    kernel = functools.partial(_moe_expert_kernel, th=th)

    out = pl.pallas_call(
        kernel,
        out_shape=jax.ShapeDtypeStruct((n_pad, dp), jnp.float32),
        grid_spec=pltpu.PrefetchScalarGridSpec(
            num_scalar_prefetch=1,
            grid=(n_tiles, e_num, n_hc),
            in_specs=[
                pl.BlockSpec((1, tm, 1), lambda m, e, h, msk: (e, m, 0)),       # gate col
                pl.BlockSpec((tm, dp), lambda m, e, h, msk: (m, 0)),            # tokens
                pl.BlockSpec((1, dp, 2 * th), lambda m, e, h, msk: (e, 0, h)),  # W1|W2
                pl.BlockSpec((1, th, dp), lambda m, e, h, msk: (e, h, 0)),      # W3
            ],
            out_specs=pl.BlockSpec((tm, dp), lambda m, e, h, msk: (m, 0)),
            scratch_shapes=[pltpu.VMEM((tm, dp), jnp.float32)],
        ),
        compiler_params=pltpu.CompilerParams(
            dimension_semantics=("parallel", "arbitrary", "arbitrary"),
            vmem_limit_bytes=budget,
        ),
    )(mask, gate_t, xp, prepared["w12"], prepared["w3"])

    return out[:n, :d].astype(out_dtype)


# ---------------------------------------------------------------------------
# Gating glue (O(N*E) work) + module wrapper
# ---------------------------------------------------------------------------
def topk_gating(logits, k):
    n, e_num = logits.shape
    probs = jax.nn.softmax(logits, axis=-1)
    top_vals, top_idx = lax.top_k(probs, k)
    denom = jnp.maximum(jnp.sum(top_vals, axis=-1, keepdims=True), 1e-20)
    top_w = top_vals / denom
    combine = jnp.sum(
        jax.nn.one_hot(top_idx, e_num, dtype=probs.dtype) * top_w[..., None],
        axis=1)                                                    # (N, E)
    mask1 = jax.nn.one_hot(top_idx[:, 0], e_num, dtype=probs.dtype)
    l_aux = jnp.sum(jnp.mean(probs, axis=0) * jnp.mean(mask1, axis=0)) * e_num
    return combine, l_aux


def deepspeed_moe_layer(x, prepared, *, k):
    b, s, d = x.shape
    x2d = x.reshape(b * s, d)                 # tokens stay (B*S, D) end-to-end
    # Tiny (N,D)x(D,E) gate GEMM in plain XLA (per perf review: a Pallas
    # tn=128 tile would waste ~(128/E - 1) of its MXU columns, and the f32
    # pad copy of x would cost more than the GEMM itself).
    logits = jnp.dot(x2d.astype(jnp.float32),
                     prepared["wg"].astype(jnp.float32))
    combine, l_aux = topk_gating(logits, k)
    out = moe_experts(x2d, combine, prepared)
    return out.reshape(b, s, d), l_aux


# ---------------------------------------------------------------------------
# Pure-JAX reference (mirrors the module forward, eval-path / no-drop routing,
# bf16 MXU operands with f32 accumulation like the kernel).
# ---------------------------------------------------------------------------
def ref_forward(x, params, *, k, compute_dtype=jnp.bfloat16):
    b, s, d = x.shape
    e_num = params["wg"].shape[1]
    xf = x.reshape(b * s, d)
    logits = xf @ params["wg"]
    probs = jax.nn.softmax(logits, axis=-1)
    top_vals, top_idx = lax.top_k(probs, k)
    top_w = top_vals / jnp.maximum(jnp.sum(top_vals, -1, keepdims=True), 1e-20)
    combine = jnp.sum(jax.nn.one_hot(top_idx, e_num) * top_w[..., None], axis=1)

    def c32(a):  # bf16-quantize operands, accumulate in f32 (MXU numerics)
        return a.astype(compute_dtype).astype(jnp.float32)

    out = jnp.zeros_like(xf)
    for e in range(e_num):
        h1 = c32(xf) @ c32(params["w1"][e])
        h2 = c32(xf) @ c32(params["w2"][e])
        a = h1 * jax.nn.silu(h2)
        y = c32(a) @ c32(params["w3"][e])
        out = out + combine[:, e:e + 1] * y
    mask1 = jax.nn.one_hot(top_idx[:, 0], e_num)
    l_aux = jnp.sum(jnp.mean(probs, 0) * jnp.mean(mask1, 0)) * e_num
    return out.reshape(b, s, d), l_aux


if __name__ == "__main__":
    # Small shapes consistent with the module: B=2, S=8, n_embd=32,
    # num_experts=4, k=2, hidden_dim = 4 * n_embd = 128.
    B, S, D, E, K_TOP = 2, 8, 32, 4, 2
    H = 4 * D

    key = jax.random.PRNGKey(0)
    k_x, k_wg, k_w1, k_w2, k_w3 = jax.random.split(key, 5)

    x = jax.random.normal(k_x, (B, S, D), dtype=jnp.float32)
    params = {
        # weights stored pre-transposed (in, out), matching y = x @ W
        "wg": jax.random.normal(k_wg, (D, E), dtype=jnp.float32) / jnp.sqrt(D),
        "w1": jax.random.normal(k_w1, (E, D, H), dtype=jnp.float32) / jnp.sqrt(D),
        "w2": jax.random.normal(k_w2, (E, D, H), dtype=jnp.float32) / jnp.sqrt(D),
        "w3": jax.random.normal(k_w3, (E, H, D), dtype=jnp.float32) / jnp.sqrt(H),
    }

    # One-time weight pad / bf16 cast / W1|W2 interleave (outside the hot path).
    prepared = prepare_moe_params(params)

    out, l_aux = deepspeed_moe_layer(x, prepared, k=K_TOP)
    out = jax.block_until_ready(out)
    l_aux = jax.block_until_ready(l_aux)

    ref_out, ref_aux = ref_forward(x, params, k=K_TOP)
    assert out.shape == (B, S, D)
    err = float(jnp.max(jnp.abs(out - ref_out)))
    assert jnp.allclose(out, ref_out, atol=2e-3, rtol=2e-3), f"max abs err {err}"
    assert jnp.allclose(l_aux, ref_aux, atol=1e-5, rtol=1e-5), (
        f"aux loss err {abs(float(l_aux) - float(ref_aux))}"
    )
    print("KERNEL_OK")
</pallas_src>

<mosaic_0001>
module attributes {stable_mosaic.version = 11 : i64} {
  func.func @_moe_expert_kernel(%arg0: i32, %arg1: i32, %arg2: i32, %arg3: memref<2x4xi32, #tpu.memory_space<smem>>, %arg4: memref<1x8x1xf32, #tpu.memory_space<vmem>>, %arg5: memref<8x128xbf16, #tpu.memory_space<vmem>>, %arg6: memref<1x128x256xbf16, #tpu.memory_space<vmem>>, %arg7: memref<1x128x128xbf16, #tpu.memory_space<vmem>>, %arg8: memref<8x128xf32, #tpu.memory_space<vmem>>, %arg9: memref<8x128xf32, #tpu.memory_space<vmem>>) attributes {dimension_semantics = [#tpu.dimension_semantics<parallel>, #tpu.dimension_semantics<arbitrary>, #tpu.dimension_semantics<arbitrary>], iteration_bounds = array<i64: 2, 4, 1>, scalar_prefetch = 1 : i64, scratch_operands = 1 : i64, tpu.core_type = #tpu.core_type<tc>, window_params = [{transform_indices = @transform_0, window_bounds = array<i64: 1, 8, 1>}, {transform_indices = @transform_1, window_bounds = array<i64: 8, 128>}, {transform_indices = @transform_2, window_bounds = array<i64: 1, 128, 256>}, {transform_indices = @transform_3, window_bounds = array<i64: 1, 128, 128>}, {transform_indices = @transform_4, window_bounds = array<i64: 8, 128>}]} {
    %c0_i32 = arith.constant 0 : i32
    %0 = arith.cmpi eq, %arg1, %c0_i32 : i32
    %c0_i32_0 = arith.constant 0 : i32
    %1 = arith.cmpi eq, %arg2, %c0_i32_0 : i32
    %2 = arith.andi %0, %1 : i1
    %3 = arith.extui %2 : i1 to i32
    %c0_i32_1 = arith.constant 0 : i32
    %4 = arith.cmpi ne, %3, %c0_i32_1 : i32
    scf.if %4 {
      %cst = arith.constant 0.000000e+00 : f32
      %16 = vector.broadcast %cst : f32 to vector<8x128xf32>
      %c0 = arith.constant 0 : index
      %c0_6 = arith.constant 0 : index
      %17 = vector.load %arg9[%c0, %c0_6] : memref<8x128xf32, #tpu.memory_space<vmem>>, vector<8x128xf32>
      tpu.vector_store %arg9[%c0, %c0_6], %16 {strides = array<i32>} : memref<8x128xf32, #tpu.memory_space<vmem>>, vector<8x128xf32>,
    } else {
    }
    %5 = arith.index_cast %arg0 : i32 to index
    %6 = arith.index_cast %arg1 : i32 to index
    %7 = memref.load %arg3[%5, %6] : memref<2x4xi32, #tpu.memory_space<smem>>
    %c0_i32_2 = arith.constant 0 : i32
    %8 = arith.cmpi ne, %7, %c0_i32_2 : i32
    %9 = arith.extui %8 : i1 to i32
    %c0_i32_3 = arith.constant 0 : i32
    %10 = arith.cmpi ne, %9, %c0_i32_3 : i32
    scf.if %10 {
      %c0 = arith.constant 0 : index
      %c0_6 = arith.constant 0 : index
      %16 = vector.load %arg5[%c0, %c0_6] : memref<8x128xbf16, #tpu.memory_space<vmem>>, vector<8x128xbf16>
      %c0_7 = arith.constant 0 : index
      %c0_8 = arith.constant 0 : index
      %c0_9 = arith.constant 0 : index
      %17 = vector.load %arg6[%c0_7, %c0_8, %c0_9] : memref<1x128x256xbf16, #tpu.memory_space<vmem>>, vector<1x128x256xbf16>
      %18 = vector.shape_cast %17 : vector<1x128x256xbf16> to vector<128x256xbf16>
      %cst = arith.constant dense<0.000000e+00> : vector<8x256xf32>
      %19 = tpu.matmul %16, %18, %cst {dimension_numbers = #tpu.dot_dimension_numbers<[1], [0], [0], [1], [0, 0, 1, 1], [], []>} : vector<8x128xbf16>, vector<128x256xbf16>, vector<8x256xf32> -> vector<8x256xf32>
      %20 = vector.extract_strided_slice %19 {offsets = [0, 0], sizes = [8, 128], strides = [1, 1]} : vector<8x256xf32> to vector<8x128xf32>
      %21 = vector.extract_strided_slice %19 {offsets = [0, 128], sizes = [8, 128], strides = [1, 1]} : vector<8x256xf32> to vector<8x128xf32>
      %22 = arith.negf %21 : vector<8x128xf32>
      %23 = math.exp %22 : vector<8x128xf32>
      %cst_10 = arith.constant 1.000000e+00 : f32
      %24 = vector.broadcast %cst_10 : f32 to vector<8x128xf32>
      %25 = arith.addf %24, %23 : vector<8x128xf32>
      %26 = arith.divf %24, %25 : vector<8x128xf32>
      %27 = arith.mulf %21, %26 : vector<8x128xf32>
      %28 = arith.mulf %20, %27 : vector<8x128xf32>
      %29 = arith.truncf %28 : vector<8x128xf32> to vector<8x128xbf16>
      %c0_11 = arith.constant 0 : index
      %c0_12 = arith.constant 0 : index
      %c0_13 = arith.constant 0 : index
      %30 = vector.load %arg7[%c0_11, %c0_12, %c0_13] : memref<1x128x128xbf16, #tpu.memory_space<vmem>>, vector<1x128x128xbf16>
      %31 = vector.shape_cast %30 : vector<1x128x128xbf16> to vector<128x128xbf16>
      %cst_14 = arith.constant dense<0.000000e+00> : vector<8x128xf32>
      %32 = tpu.matmul %29, %31, %cst_14 {dimension_numbers = #tpu.dot_dimension_numbers<[1], [0], [0], [1], [0, 0, 1, 1], [], []>} : vector<8x128xbf16>, vector<128x128xbf16>, vector<8x128xf32> -> vector<8x128xf32>
      %c0_15 = arith.constant 0 : index
      %c0_16 = arith.constant 0 : index
      %33 = vector.load %arg9[%c0_15, %c0_16] : memref<8x128xf32, #tpu.memory_space<vmem>>, vector<8x128xf32>
      %c0_17 = arith.constant 0 : index
      %c0_18 = arith.constant 0 : index
      %c0_19 = arith.constant 0 : index
      %34 = vector.load %arg4[%c0_17, %c0_18, %c0_19] : memref<1x8x1xf32, #tpu.memory_space<vmem>>, vector<1x8x1xf32>
      %35 = vector.shape_cast %34 : vector<1x8x1xf32> to vector<8x1xf32>
      %36 = vector.broadcast %35 : vector<8x1xf32> to vector<8x128xf32>
      %37 = arith.mulf %36, %32 : vector<8x128xf32>
      %38 = arith.addf %33, %37 : vector<8x128xf32>
      %c0_20 = arith.constant 0 : index
      %c0_21 = arith.constant 0 : index
      %39 = vector.load %arg9[%c0_20, %c0_21] : memref<8x128xf32, #tpu.memory_space<vmem>>, vector<8x128xf32>
      tpu.vector_store %arg9[%c0_20, %c0_21], %38 {strides = array<i32>} : memref<8x128xf32, #tpu.memory_space<vmem>>, vector<8x128xf32>,
    } else {
    }
    %c3_i32 = arith.constant 3 : i32
    %11 = arith.cmpi eq, %arg1, %c3_i32 : i32
    %c0_i32_4 = arith.constant 0 : i32
    %12 = arith.cmpi eq, %arg2, %c0_i32_4 : i32
    %13 = arith.andi %11, %12 : i1
    %14 = arith.extui %13 : i1 to i32
    %c0_i32_5 = arith.constant 0 : i32
    %15 = arith.cmpi ne, %14, %c0_i32_5 : i32
    scf.if %15 {
      %c0 = arith.constant 0 : index
      %c0_6 = arith.constant 0 : index
      %16 = vector.load %arg9[%c0, %c0_6] : memref<8x128xf32, #tpu.memory_space<vmem>>, vector<8x128xf32>
      %c0_7 = arith.constant 0 : index
      %c0_8 = arith.constant 0 : index
      %17 = vector.load %arg8[%c0_7, %c0_8] : memref<8x128xf32, #tpu.memory_space<vmem>>, vector<8x128xf32>
      tpu.vector_store %arg8[%c0_7, %c0_8], %16 {strides = array<i32>} : memref<8x128xf32, #tpu.memory_space<vmem>>, vector<8x128xf32>,
    } else {
    }
    return
  }
  func.func @transform_0(%arg0: i32, %arg1: i32, %arg2: i32, %arg3: memref<2x4xi32, #tpu.memory_space<smem>>) -> (i32, i32, i32) {
    %c0_i32 = arith.constant 0 : i32
    %c0_i32_0 = arith.constant 0 : i32
    return %arg1, %arg0, %c0_i32 : i32, i32, i32
  }
  func.func @transform_1(%arg0: i32, %arg1: i32, %arg2: i32, %arg3: memref<2x4xi32, #tpu.memory_space<smem>>) -> (i32, i32) {
    %c0_i32 = arith.constant 0 : i32
    %c0_i32_0 = arith.constant 0 : i32
    return %arg0, %c0_i32 : i32, i32
  }
  func.func @transform_2(%arg0: i32, %arg1: i32, %arg2: i32, %arg3: memref<2x4xi32, #tpu.memory_space<smem>>) -> (i32, i32, i32) {
    %c0_i32 = arith.constant 0 : i32
    %c0_i32_0 = arith.constant 0 : i32
    return %arg1, %c0_i32, %arg2 : i32, i32, i32
  }
  func.func @transform_3(%arg0: i32, %arg1: i32, %arg2: i32, %arg3: memref<2x4xi32, #tpu.memory_space<smem>>) -> (i32, i32, i32) {
    %c0_i32 = arith.constant 0 : i32
    %c0_i32_0 = arith.constant 0 : i32
    return %arg1, %arg2, %c0_i32 : i32, i32, i32
  }
  func.func @transform_4(%arg0: i32, %arg1: i32, %arg2: i32, %arg3: memref<2x4xi32, #tpu.memory_space<smem>>) -> (i32, i32) {
    %c0_i32 = arith.constant 0 : i32
    %c0_i32_0 = arith.constant 0 : i32
    return %arg0, %c0_i32 : i32, i32
  }
}

</mosaic_0001>

<bundles_post_ra>
// kernel: tpu_custom_call.1
= control target key start
LH: loop header
LB: loop body
LE: loop exit
PB: predicated region body
PF: predicated region fallthrough
CT: control target
= control target key end

     0   :  { %s1586_s0 = inlined_call_operand.vmem [shape: s32[2,4], index: 0, kind: input, shape index: {}]   ;;  %s1587_s1 = inlined_call_operand.vmem [shape: f32[4,16,1], index: 1, kind: input, shape index: {}]   ;;  %s1588_s2 = inlined_call_operand.vmem [shape: bf16[16,128], index: 2, kind: input, shape index: {}]   ;;  %s1589_s3 = inlined_call_operand.hbm [shape: bf16[4,128,256], index: 3, kind: input, shape index: {}]   ;;  %s1590_s4 = inlined_call_operand.hbm [shape: bf16[4,128,128], index: 4, kind: input, shape index: {}]   ;;  %s1591_s5 = inlined_call_operand.hbm [shape: f32[16,128], index: 5, kind: output, shape index: {}]  }
   0x1   :  { %1599 = sst [smem:[#allocation20_spill]] %s1589_s3  ;;  %s10_s20 = sshll.u32 %s1586_s0, 4  ;;  %s11_s20 = int_to_ptr.vmem [resolvable:$true] %s10_s20 }
   0x2   :  { %s1021_s21 = scalar_lea.vmem %s11_s20, 32  ;;  %p1026_p1 = scmp.lt.s32.totalorder %s11_s20, %s11_s20 }
   0x3   :  { %p1022_p0 = scmp.ne.s32.totalorder %s11_s20, %s1021_s21  ;;  %p1027_p2 = scmp.lt.s32.totalorder %s1021_s21, %s1021_s21 }
   0x5   :  { %p1028_p3 = por %p1027_p2, %p1026_p1 }
   0x7   :  { %p1029_p4 = pnand %p1028_p3, %p1022_p0 }
   0x9   :  { %1032 = shalt.err (!%p1029_p4)  }
   0xa   :  { %s1223_s22 = smov [#allocation4]  }
   0xb   :  { %13 = dma.vmem_to_smem %s11_s20, 32, %s1223_s22, [#allocation3] }
   0xc   :  { %1165 = dma.done.wait [#allocation3], 32 }
   0xd   :  { %1166 = vsyncadd [#allocation3], 4294967264 }
   0xe   :  { %15 = sfence }
   0xf   :  { %16 = vsyncpa [#allocation6], 0 }
  0x10   :  { %18 = vsyncpa [#allocation6 + $0x1], 0 }
  0x11   :  { %19 = vsyncpa [#allocation9], 0 }
  0x12   :  { %21 = vsyncpa [#allocation9 + $0x1], 0 }
  0x13   :  { %22 = vsyncpa [#allocation7], 0 }
  0x14   :  { %24 = vsyncpa [#allocation7 + $0x1], 0  ;;  %s1268_s0 = smov 0   ;;  %s1270_s23 = smov 0  }
  0x15   :  { %s1272_s24 = smov 0   ;;  %s1274_s25 = smov 0  }
  0x16   :  { %s1276_s26 = smov 0   ;;  %s1278_s27 = smov 0  }
  0x17   :  { %s1280_s28 = smov 0   ;;  %s1282_s29 = smov 0  }
  0x18   :  { %s1284_s30 = smov 0   ;;  %s1286_s6 = smov 0  }
  0x19   :  { %s1288_s7 = smov 0  }
  0x1a LB: > { %1600 = sst [smem:[#allocation15_spill]] %s1201_s27  ;;  %s785_s8 = sadd.s32 4294967295, %s1221_s7   ;;  %s1221_s7 = sphi %s1288_s7, %s30_s7   ;;  %s1217_s6 = sphi %s1286_s6, %s1620_s6   ;;  %s1213_s30 = sphi %s1284_s30, %s1627_s30   ;;  %s1209_s29 = sphi %s1282_s29, %s1618_s29   ;;  %s1205_s28 = sphi %s1280_s28, %s1626_s28   ;;  %s1201_s27 = sphi %s1278_s27, %s1617_s27   ;;  %s1197_s26 = sphi %s1276_s26, %s1625_s26   ;;  %s1193_s25 = sphi %s1274_s25, %s1624_s25   ;;  %s1189_s24 = sphi %s1272_s24, %s1623_s24   ;;  %s1185_s23 = sphi %s1270_s23, %s1622_s23   ;;  %s1181_s0 = sphi %s1268_s0, %s1621_s0  }
  0x1b   : > { %1601 = sst [smem:[#allocation16_spill]] %s1217_s6  ;;  %s786_s9 = sadd.s32 4294967294, %s1221_s7  }
  0x1c   : > { %s45_s10 = sadd.s32 1, %s1213_s30  ;;  %s49_s11 = sadd.s32 1, %s1217_s6 }
  0x1d   : > { %p47_p5 = scmp.ge.s32.totalorder %s45_s10, 4  ;;  %s112_s12 = sadd.s32 1, %s1201_s27 }
  0x1e   : > { %p119_p6 = scmp.ne.s32.totalorder %s1201_s27, %s1197_s26  ;;  %p120_p7 = scmp.eq.s32.totalorder %s1221_s7, 0 }
  0x1f   : > { %s1629_s10 = smov (%p47_p5, %s45_s10), 0  ;;  %s1631_s11 = smov (!%p47_p5, %s49_s11), %s1217_s6 }
  0x20   : > { %1602 = sst [smem:[#allocation17_spill]] %s1629_s10  ;;  %s107_s13 = ssub.s32 %s1213_s30, %s1629_s10 }
  0x21   : > { %p1334_p8 = por %p120_p7, %p119_p6  ;;  %p51_p9 = scmp.ge.s32.totalorder %s1631_s11, 2 }
  0x22   : > { %p110_p10 = scmp.eq.s32.totalorder %s107_s13, 0  ;;  %p125_p11 = scmp.ne.s32.totalorder %s1197_s26, %s1193_s25 }
  0x23   : > { %p126_p12 = scmp.eq.s32.totalorder %s785_s8, 0  ;;  %s1633_s11 = smov (%p51_p9, %s1631_s11), 0 }
  0x24   : > { %1604 = sst [smem:[#allocation18_spill]] %s1633_s11  ;;  %s163_s17 = ssub.s32 %s1217_s6, %s1633_s11 }
  0x25   : > { %s1342_s15 = scalar_select %p110_p10, %s1201_s27, %s112_s12  }
  0x26   : > { %p1344_p13 = por %p126_p12, %p125_p11  ;;  %p164_p0 = scmp.eq.s32.totalorder %s163_s17, 0 }
  0x27   : > { %1605 = sst [smem:[#allocation19_spill]] %s1342_s15  ;;  %s166_s18 = sadd.s32 1, %s1189_s24 }
  0x28   : > { %s1606_s16 = scalar_select %p1344_p13, 1, 0 }
  0x29   : > { %p176_p1 = scmp.ne.s32.totalorder %s1189_s24, %s1185_s23  ;;  %p177_p2 = scmp.eq.s32.totalorder %s785_s8, 7 }
  0x2a   : > { %s1354_s19 = scalar_select %p164_p0, %s1189_s24, %s166_s18  }
  0x2b   : > { %p1356_p3 = por %p177_p2, %p176_p1  ;;  %p182_p4 = scmp.ne.s32.totalorder %s1185_s23, %s1181_s0 }
  0x2c   : > { %p183_p5 = scmp.eq.s32.totalorder %s786_s9, 7  ;;  %p885_p6 = scmp.lt.s32.totalorder %s1221_s7, 8 }
  0x2d   : > { %s1607_s20 = scalar_select %p1356_p3, 1, 0 }
  0x2e   : > { %s1364_s21 = sand.u32 1, %s1201_s27   ;;  %p1366_p7 = por %p183_p5, %p182_p4 }
  0x2f   : > { %s789_s25 = sshll.u32 %s1364_s21, 7  ;;  %s835_s12 = sshll.u32 %s1213_s30, 11 }
  0x30   : > { %s1608_s22 = scalar_select %p1366_p7, 1, 0 }
  0x31   : > { %s1609_s3 = sld [smem:[#allocation20_spill]]  ;;  %s225_s9 = scalar_lea.vmem [#allocation5], %s789_s25 }
  0x32   : > { %s234_s18 = sshll.u32 %s225_s9, 4  ;;  %p1379_p9 = pnand %p885_p6, %p1334_p8  ;;  %s1383_s18 = int_to_ptr.vmem [resolvable:$true] %s234_s18 }
  0x33   : > { %s222_s10 = scalar_lea.sflag [#allocation6], %s1364_s21 }
  0x34   : > { %p1035_p11 = pneg %p1379_p9 }
  0x37   : > { %s1375_s17 = scalar_lea.hbm %s1609_s3, %s835_s12  ;;  %s1038_s14 = scalar_lea.hbm %s1609_s3, 8192 }
  0x38   : > { %s1033_s6 = scalar_lea.hbm %s1375_s17, 2048  ;;  %p1039_p8 = scmp.lt.u32.totalorder %s1375_s17, %s1609_s3 }
  0x39   : > { %p1034_p10 = scmp.ne.s32.totalorder %s1375_s17, %s1033_s6  ;;  %p1040_p1 = scmp.lt.u32.totalorder %s1038_s14, %s1033_s6 }
  0x3a   : > { %p1042_p4 = scmp.lt.u32.totalorder %s1033_s6, %s1375_s17 }
  0x3b   : > { %p1036_p12 = pnand %p1035_p11, %p1034_p10  ;;  %p1041_p2 = por %p1040_p1, %p1039_p8 }
  0x3d   : > { %p1037_p0 = pneg %p1036_p12  ;;  %p1043_p5 = por %p1042_p4, %p1041_p2 }
  0x3f   : > { %p1044_p6 = pnand %p1043_p5, %p1037_p0 }
  0x41   : > { %1047 = shalt.err (!%p1044_p6)
}
  0x42   : > { %s1048_s9 = scalar_lea.vmem %s1383_s18, 2048  ;;  %s1224_s25 = smov [#allocation5]  }
  0x43   : > { %p1049_p10 = scmp.ne.s32.totalorder %s1383_s18, %s1048_s9  ;;  %s1053_s12 = sshll.u32 %s1224_s25, 4  ;;  %s1054_s12 = int_to_ptr.vmem [resolvable:$false] %s1053_s12 }
  0x44   : > { %s1055_s8 = scalar_lea.vmem %s1054_s12, 4096  ;;  %p1056_p3 = scmp.lt.s32.totalorder %s1383_s18, %s1054_s12 }
  0x45   : > { %p1051_p12 = pnand %p1049_p10, %p1035_p11  ;;  %p1057_p8 = scmp.lt.s32.totalorder %s1055_s8, %s1048_s9 }
  0x47   : > { %p1052_p7 = pneg %p1051_p12  ;;  %p1058_p1 = por %p1057_p8, %p1056_p3 }
  0x49   : > { %p1059_p2 = pnand %p1058_p1, %p1052_p7 }
  0x4b   : > { %1062 = shalt.err (!%p1059_p2)
}
  0x4c   : > { %s1225_s6 = smov 128   ;;  %s1226_s14 = smov 8  }
  0x4d   : > { %877 = dma.hbm_to_vmem [thread:$0]  (!%p1379_p9), %s1375_s17, 2048, %s1383_s18, %s222_s10, %s1225_s6, %s1225_s6, %s1226_s14  }
  0x4e   : > { %p795_p0 = scmp.ge.s32.totalorder %s1221_s7, 1  ;;  %p265_p4 = scmp.lt.s32.totalorder %s1221_s7, 9 }
  0x4f   : > { %s792_s13 = sshll.u32 %s1364_s21, 6  ;;  %s836_s25 = sshll.u32 %s1213_s30, 10 }
  0x50   : > { %p1416_p3 = pnand %p795_p0, %p265_p4  ;;  %s248_s12 = scalar_lea.vmem [#allocation8], %s792_s13 }
  0x51   : > { %s257_s8 = sshll.u32 %s248_s12, 4  ;;  %s1424_s27 = scalar_lea.hbm %s1590_s4, %s836_s25  ;;  %s1426_s8 = int_to_ptr.vmem [resolvable:$true] %s257_s8 }
  0x52   : > { %s245_s10 = scalar_lea.sflag [#allocation9], %s1364_s21  ;;  %s1063_s17 = scalar_lea.hbm %s1424_s27, 1024 }
  0x53   : > { %p1064_p7 = scmp.ne.s32.totalorder %s1424_s27, %s1063_s17  ;;  %s1068_s14 = scalar_lea.hbm %s1590_s4, 4096 }
  0x54   : > { %p1069_p10 = scmp.lt.u32.totalorder %s1424_s27, %s1590_s4  ;;  %p1070_p12 = scmp.lt.u32.totalorder %s1068_s14, %s1063_s17 }
  0x55   : > { %p1066_p5 = pnand %p1064_p7, %p1035_p11  ;;  %p1072_p1 = scmp.lt.u32.totalorder %s1063_s17, %s1424_s27 }
  0x56   : > { %p1071_p8 = por %p1070_p12, %p1069_p10 }
  0x57   : > { %p1067_p6 = pneg %p1066_p5 }
  0x58   : > { %p1073_p2 = por %p1072_p1, %p1071_p8 }
  0x5a   : > { %p1074_p0 = pnand %p1073_p2, %p1067_p6 }
  0x5c   : > { %1077 = shalt.err (!%p1074_p0)
}
  0x5d   : > { %s1078_s13 = scalar_lea.vmem %s1426_s8, 1024  ;;  %s1227_s25 = smov [#allocation8]  }
  0x5e   : > { %p1079_p4 = scmp.ne.s32.totalorder %s1426_s8, %s1078_s13  ;;  %s1083_s12 = sshll.u32 %s1227_s25, 4  ;;  %s1084_s12 = int_to_ptr.vmem [resolvable:$false] %s1083_s12 }
  0x5f   : > { %s1085_s18 = scalar_lea.vmem %s1084_s12, 2048  ;;  %p1086_p13 = scmp.lt.s32.totalorder %s1426_s8, %s1084_s12 }
  0x60   : > { %p1081_p7 = pnand %p1079_p4, %p1035_p11  ;;  %p1087_p10 = scmp.lt.s32.totalorder %s1085_s18, %s1078_s13 }
  0x62   : > { %p1082_p5 = pneg %p1081_p7  ;;  %p1088_p12 = por %p1087_p10, %p1086_p13 }
  0x64   : > { %p1089_p8 = pnand %p1088_p12, %p1082_p5 }
  0x66   : > { %1092 = shalt.err (!%p1089_p8)
}
  0x67   : > { %s1228_s17 = smov 64   ;;  %s1229_s6 = smov 4  }
  0x68   : > { %880 = dma.hbm_to_vmem [thread:$0]  (!%p1379_p9), %s1424_s27, 1024, %s1426_s8, %s245_s10, %s1228_s17, %s1228_s17, %s1229_s6  }
  0x69   : > { %269 = sbr.rel (%p1416_p3) target bundleno = 670 (0x29e), region = 36  ;;  %s271_s14 = sand.u32 (!%p1416_p3), 1, %s1197_s26  }
  0x6a   : > { %s796_s3 = sshll.u32 (!%p1416_p3), %s271_s14, 7  ;;  %s272_s15 = scalar_lea.sflag (!%p1416_p3), [#allocation6], %s271_s14 }
  0x6b   : > { %s1457_s13 = scalar_lea.vmem (!%p1416_p3), [#allocation5], %s796_s3  ;;  %p1612_p13 = scmp.ne.s32.totalorder (!%p1416_p3), %s1606_s16, 0 }
  0x70   : > { %1168 = dma.done.wait (%p1612_p13), %s272_s15, 2048  }
  0x71   : > { %1170 = vsyncadd (%p1612_p13), %s272_s15, 4294965248  ;;  %s797_s25 = sshll.u32 %s271_s14, 6  ;;  %s281_s11 = scalar_lea.sflag [#allocation9], %s271_s14 }
  0x72   : > { %s1463_s21 = scalar_lea.vmem [#allocation8], %s797_s25 }
  0x73   : > { %1172 = dma.done.wait (%p1612_p13), %s281_s11, 1024  }
  0x74   : > { %1174 = vsyncadd (%p1612_p13), %s281_s11, 4294966272  ;;  %s1598_s27 = sand.u32 1, %s1185_s23   ;;  %p326_p9 = scmp.lt.s32.totalorder %s1205_s28, 3 }
  0x75   : > { %s1473_s9 = sshll.u32 %s1598_s27, 3  ;;  %p328_p11 = scmp.lt.s32.totalorder %s1209_s29, 1 }
  0x76   : > { %p341_p3 = scmp.eq.s32.totalorder %s1205_s28, 0  ;;  %s325_s27 = scalar_lea.vmem [#allocation10], %s1473_s9 }
  0x77   : > { %s327_s8 = scalar_select %p326_p9, %s1205_s28, 3 }
  0x78   : > { %s329_s10 = scalar_select %p328_p11, %s1209_s29, 1 }
  0x79   : > { %s799_s12 = sshll.u32 %s327_s8, 1  ;;  %346 = sbr.rel (!%p341_p3) target bundleno = 128 (0x80), region = 48  ;;  %v1230_v0 = vmov (%p341_p3), 0.0  }
  0x7a   : > { %s331_s16 = sadd.s32 %s799_s12, %s329_s10  ;;  %s801_s18 = sshll.u32 %s329_s10, 2  ;;  %347 = vst [vmem:[#allocation2] sm:$0xff] (%p341_p3), %v1230_v0 }
  0x7b   : > { %s800_s17 = sshll.u32 %s331_s16, 3  ;;  %s1482_s3 = scalar_lea.vmem %s1588_s2, %s801_s18 }
  0x7c   : > { %s1487_s11 = scalar_lea.vmem %s1587_s1, %s800_s17 }
  0x80 PF: > { %s348_s8 = sshra.s32 %s1205_s28, 7  ;;  %s353_s10 = sand.u32 127, %s1205_s28 }
  0x81   : > { %s350_s12 = sadd.s32 %s1209_s29, %s348_s8 }
  0x82   : > { %s803_s16 = sshll.u32 %s350_s12, 7 }
  0x83   : > { %s354_s6 = sadd.s32 %s803_s16, %s353_s10 }
  0x84   : > { %s355_s18 = sld [smem:[#allocation4 + %s354_s6]] }
  0x8a   : > { %p804_p6 = scmp.eq.s32.totalorder %s355_s18, 0 }
  0x8b   : > { %v985_v1 = vld [vmem:[%s1457_s13 + $0x4] ss:$8 sps:$4 sm:$0xff] (!%p804_p6)   ;;  %v987_v2 = vld [vmem:[%s1457_s13] ss:$8 sps:$4 sm:$0xff] (!%p804_p6)   ;;  %v1231_v3 = vmov (!%p804_p6), 0   ;;  %v1232_v20 = vmov (!%p804_p6), 0.0  }
  0x8c   : > { %359 = sbr.rel (%p804_p6) target bundleno = 635 (0x27b), region = 52  ;;  %489 = vmatprep.mubr.bf16.mxu0 (!%p804_p6), %v1231_v3  ;;  %984 = vset.pattern.permute.xlu0 (!%p804_p6), %v1231_v3  ;;  %v988_v4 = vld [vmem:[%s1457_s13 + $0x14] ss:$8 sps:$4 sm:$0xff] (!%p804_p6)   ;;  %v990_v5 = vld [vmem:[%s1457_s13 + $0x10] ss:$8 sps:$4 sm:$0xff] (!%p804_p6)   ;;  %v1009_v19 = vld [vmem:[%s1463_s21] sm:$0xff] (!%p804_p6)  }
  0x8d   : > { %457 = vmatprep.subr.bf16.mxu0 (!%p804_p6), %v985_v1  ;;  %v991_v6 = vld [vmem:[%s1457_s13 + $0x24] ss:$8 sps:$4 sm:$0xff] (!%p804_p6)   ;;  %v993_v7 = vld [vmem:[%s1457_s13 + $0x20] ss:$8 sps:$4 sm:$0xff] (!%p804_p6)   ;;  %v994_v8 = vld [vmem:[%s1457_s13 + $0x34] ss:$8 sps:$4 sm:$0xff] (!%p804_p6)   ;;  %848 = vmatprep.subr.bf16.mxu1 (!%p804_p6), %v1232_v20 }
  0x8e   : > { %458 = vmatpush1.bf16.msra.mxu0 (!%p804_p6), %v987_v2  ;;  %v996_v9 = vld [vmem:[%s1457_s13 + $0x30] ss:$8 sps:$4 sm:$0xff] (!%p804_p6)   ;;  %v997_v10 = vld [vmem:[%s1457_s13 + $0x44] ss:$8 sps:$4 sm:$0xff] (!%p804_p6)   ;;  %v999_v11 = vld [vmem:[%s1457_s13 + $0x40] ss:$8 sps:$4 sm:$0xff] (!%p804_p6)   ;;  %849 = vmatpush3.bf16.msra.mxu1 (!%p804_p6), %v1009_v19 }
  0x8f   : > { %459 = vmatprep.subr.bf16.mxu0 (!%p804_p6), %v988_v4  ;;  %v1000_v12 = vld [vmem:[%s1457_s13 + $0x54] ss:$8 sps:$4 sm:$0xff] (!%p804_p6)   ;;  %v1002_v13 = vld [vmem:[%s1457_s13 + $0x50] ss:$8 sps:$4 sm:$0xff] (!%p804_p6)   ;;  %v1003_v14 = vld [vmem:[%s1457_s13 + $0x64] ss:$8 sps:$4 sm:$0xff] (!%p804_p6)   ;;  %850 = vmatprep.subr.bf16.mxu1 (!%p804_p6), %v1232_v20 }
  0x90   : > { %v1005_v15 = vld [vmem:[%s1457_s13 + $0x60] ss:$8 sps:$4 sm:$0xff] (!%p804_p6)   ;;  %v1006_v16 = vld [vmem:[%s1457_s13 + $0x74] ss:$8 sps:$4 sm:$0xff] (!%p804_p6)   ;;  %v1008_v17 = vld [vmem:[%s1457_s13 + $0x70] ss:$8 sps:$4 sm:$0xff] (!%p804_p6)  }
  0x91   : > { %v360_v18 = vld [vmem:[%s1482_s3] sm:$0xf] (!%p804_p6)  ;;  %v1010_v21 = vld [vmem:[%s1463_s21 + $0x8] sm:$0xff] (!%p804_p6)   ;;  %v1011_v22 = vld [vmem:[%s1463_s21 + $0x10] sm:$0xff] (!%p804_p6)   ;;  %vm1233_vm0 = vmmov (!%p804_p6), 0  }
  0x92   : > { %460 = vmatpush1.bf16.msra.mxu0 (!%p804_p6), %v990_v5  ;;  %851 = vmatpush3.bf16.msra.mxu1 (!%p804_p6), %v1010_v21  ;;  %v1012_v23 = vld [vmem:[%s1463_s21 + $0x18] sm:$0xff] (!%p804_p6)   ;;  %v1013_v24 = vld [vmem:[%s1463_s21 + $0x20] sm:$0xff] (!%p804_p6)   ;;  %v1014_v25 = vld [vmem:[%s1463_s21 + $0x28] sm:$0xff] (!%p804_p6)  }
  0x93   : > { %461 = vmatprep.subr.bf16.mxu0 %v991_v6  ;;  %852 = vmatprep.subr.bf16.mxu1 %v1232_v20  ;;  %v1015_v26 = vld [vmem:[%s1463_s21 + $0x30] sm:$0xff]   ;;  %v1016_v27 = vld [vmem:[%s1463_s21 + $0x38] sm:$0xff]  }
  0x94   : > { %864 = vmatprep.mubr.msk.bf16.mxu1 %vm1233_vm0, %v1232_v20  ;;  %v612_v28 = vld [vmem:[%s1487_s11] sm:$0xff] }
  0x95   : > { %615 = vperm.xlu0 %984, %v612_v28   ;;  %v611_v42 = vld [vmem:[#allocation2] sm:$0xff] }
  0x96   : > { %462 = vmatpush1.bf16.msra.mxu0 %v993_v7  ;;  %853 = vmatpush3.bf16.msra.mxu1 %v1011_v22 }
  0x97   : > { %463 = vmatprep.subr.bf16.mxu0 %v994_v8  ;;  %854 = vmatprep.subr.bf16.mxu1 %v1232_v20 }
  0x9a   : > { %464 = vmatpush1.bf16.msra.mxu0 %v996_v9  ;;  %855 = vmatpush3.bf16.msra.mxu1 %v1012_v23 }
  0x9b   : > { %465 = vmatprep.subr.bf16.mxu0 %v997_v10  ;;  %856 = vmatprep.subr.bf16.mxu1 %v1232_v20 }
  0x9e   : > { %466 = vmatpush1.bf16.msra.mxu0 %v999_v11  ;;  %857 = vmatpush3.bf16.msra.mxu1 %v1013_v24 }
  0x9f   : > { %467 = vmatprep.subr.bf16.mxu0 %v1000_v12  ;;  %858 = vmatprep.subr.bf16.mxu1 %v1232_v20 }
  0xa2   : > { %468 = vmatpush1.bf16.msra.mxu0 %v1002_v13  ;;  %859 = vmatpush3.bf16.msra.mxu1 %v1014_v25 }
  0xa3   : > { %469 = vmatprep.subr.bf16.mxu0 %v1003_v14  ;;  %860 = vmatprep.subr.bf16.mxu1 %v1232_v20 }
  0xa6   : > { %470 = vmatpush1.bf16.msra.mxu0 %v1005_v15  ;;  %861 = vmatpush3.bf16.msra.mxu1 %v1015_v26 }
  0xa7   : > { %471 = vmatprep.subr.bf16.mxu0 %v1006_v16  ;;  %862 = vmatprep.subr.bf16.mxu1 %v1232_v20 }
  0xaa   : > { %472 = vmatpush1.bf16.msra.mxu0 %v1008_v17  ;;  %863 = vmatpush3.bf16.msra.mxu1 %v1016_v27 }
  0xad   : > { %490 = vmatmul.mubr.bf16.vlgmr.msra.gmra.mrb[0].mxu0 %v360_v18 }
 0x114   : > { %v616_v40 = vpop.permute.xlu0 %615 }
 0x180   : > { %v491_v29 = vpop.f32.mrb[0].mxu0 }
 0x181   : > { %v493_v30 = vpop.f32.mrb[1].mxu0 }
 0x182   : > { %v821_v31 = vmul.f32 -1.442695, %v493_v30  ;;  %v495_v32 = vpop.f32.mrb[2].mxu0 }
 0x183   : > { %v496_v33 = vpop.f32.mrb[3].mxu0 }
 0x184   : > { %1017 = vpow2.f32 %v821_v31 }
 0x18e   : > { %v1018_v34 = vpop.eup %1017 }
 0x18f   : > { %v501_v35 = vadd.f32 1.0, %v1018_v34 }
 0x191   : > { %1019 = vrcp.f32 %v501_v35 }
 0x19b   : > { %v1020_v36 = vpop.eup %1019 }
 0x19c   : > { %v504_v37 = vmul.f32 %v1020_v36, %v493_v30 }
 0x19e   : > { %v505_v38 = vmul.f32 %v504_v37, %v491_v29 }
 0x1a0   : > { %v506_v39 = vpack.c.bf16 %v505_v38, %v505_v38 }
 0x1a2   : > { %865 = vmatmul.mubr.bf16.vlgmr.msra.gmra.mrb[0].mxu1 %v506_v39 }
 0x275   : > { %v605_v41 = vpop.f32.mrb[0].mxu1 }
 0x276   : > { %v618_v43 = vmul.f32 %v616_v40, %v605_v41  ;;  %v866_v44 = vpop.f32.mrb[1].mxu1 }
 0x277   : > { %v608_v45 = vpop.f32.mrb[2].mxu1 }
 0x278   : > { %v619_v46 = vadd.f32 %v618_v43, %v611_v42  ;;  %v867_v47 = vpop.f32.mrb[3].mxu1 }
 0x27a   : > { %620 = vst [vmem:[#allocation2] sm:$0xff] %v619_v46 }
 0x27b PF: > { %p621_p1 = scmp.eq.s32.totalorder %s1205_s28, 3 }
 0x27d   : > { %625 = sbr.rel (!%p621_p1) target bundleno = 644 (0x284), region = 56 }
 0x281   : > { %v626_v48 = vld [vmem:[#allocation2] sm:$0xff] (%p621_p1) }
 0x282   : > { %627 = vst [vmem:[%s325_s27] sm:$0xff] (%p621_p1), %v626_v48 }
 0x284 PF: > { %s832_s13 = sshll.u32 %s1209_s29, 7  ;;  %s642_s3 = sshll.u32 %s325_s27, 4  ;;  %s643_s3 = int_to_ptr.vmem [resolvable:$true] %s642_s3 }
 0x285   : > { %s1526_s14 = scalar_lea.hbm %s1591_s5, %s832_s13  ;;  %s1613_s28 = sand.u32 1, %s1185_s23  }
 0x286   : > { %s629_s15 = scalar_lea.sflag [#allocation7], %s1613_s28  ;;  %s1093_s25 = scalar_lea.vmem %s643_s3, 128 }
 0x287   : > { %p1094_p2 = scmp.ne.s32.totalorder %s643_s3, %s1093_s25  ;;  %p1614_p0 = scmp.ne.s32.totalorder %s1607_s20, 0 }
 0x288   : > { %s1234_s11 = smov [#allocation10]  }
 0x289   : > { %p1095_p4 = pnand %p1094_p2, %p1614_p0  ;;  %s1097_s8 = sshll.u32 %s1234_s11, 4  ;;  %s1098_s8 = int_to_ptr.vmem [resolvable:$false] %s1097_s8 }
 0x28a   : > { %s1099_s10 = scalar_lea.vmem %s1098_s8, 256  ;;  %p1100_p5 = scmp.lt.s32.totalorder %s643_s3, %s1098_s8 }
 0x28b   : > { %p1096_p7 = pneg %p1095_p4  ;;  %p1101_p10 = scmp.lt.s32.totalorder %s1099_s10, %s1093_s25 }
 0x28d   : > { %p1102_p12 = por %p1101_p10, %p1100_p5 }
 0x28f   : > { %p1103_p8 = pnand %p1102_p12, %p1096_p7 }
 0x291   : > { %1106 = shalt.err (!%p1103_p8)
}
 0x292   : > { %s1107_s29 = scalar_lea.hbm %s1526_s14, 128  ;;  %s1111_s12 = scalar_lea.hbm %s1591_s5, 256 }
 0x293   : > { %p1108_p13 = scmp.ne.s32.totalorder %s1526_s14, %s1107_s29  ;;  %p1112_p3 = scmp.lt.u32.totalorder %s1526_s14, %s1591_s5 }
 0x294   : > { %p1113_p6 = scmp.lt.u32.totalorder %s1111_s12, %s1107_s29  ;;  %p1115_p2 = scmp.lt.u32.totalorder %s1107_s29, %s1526_s14 }
 0x295   : > { %p1109_p9 = pnand %p1108_p13, %p1614_p0 }
 0x296   : > { %p1114_p1 = por %p1113_p6, %p1112_p3 }
 0x297   : > { %p1110_p11 = pneg %p1109_p9 }
 0x298   : > { %p1116_p4 = por %p1115_p2, %p1114_p1 }
 0x29a   : > { %p1117_p7 = pnand %p1116_p4, %p1110_p11 }
 0x29c   : > { %1120 = shalt.err (!%p1117_p7)
}
 0x29d   : > { %872 = dma.vmem_to_hbm [thread:$0]  (%p1614_p0), %s643_s3, 128, %s1526_s14, %s629_s15  }
 0x29e PF: > { %p886_p5 = scmp.ge.s32.totalorder %s1221_s7, 2  ;;  %s654_s18 = sand.u32 1, %s1181_s0  }
 0x29f   : > { %p1615_p10 = scmp.ne.s32.totalorder %s1608_s22, 0  ;;  %s655_s13 = scalar_lea.sflag [#allocation7], %s654_s18 }
 0x2a1   : > { %p882_p12 = pnand %p886_p5, %p1615_p10 }
 0x2a3   : > { %1176 = dma.done.wait (!%p882_p12), %s655_s13, 128  }
 0x2a4   : > { %1178 = vsyncadd (!%p882_p12), %s655_s13, 4294967168  ;;  %s30_s7 = sadd.s32 1, %s1221_s7   ;;  %s1616_s20 = sld [smem:[#allocation15_spill]] }
 0x2a5   : > { %p27_p8 = scmp.ge.s32.totalorder %s30_s7, 10   ;;  %s1617_s27 = sld [smem:[#allocation19_spill]] }
 0x2a6   : > { %s1618_s29 = sld [smem:[#allocation16_spill]]  ;;  %s1619_s21 = sld [smem:[#allocation17_spill]] }
 0x2a7   : > { %s1620_s6 = sld [smem:[#allocation18_spill]]  ;;  %s1621_s0 = smov %s1185_s23 }
 0x2a8   : > { %s1622_s23 = smov %s1189_s24  ;;  %s1623_s24 = smov %s1354_s19 }
 0x2a9   : > { %s1624_s25 = smov %s1197_s26  ;;  %s1626_s28 = smov %s1213_s30 }
 0x2aa   : > { %s1625_s26 = smov %s1616_s20  ;;  %29 = sbr.rel (!%p27_p8) target bundleno = 26 (0x1a), region = 112 }
 0x2ac   : > { %s1627_s30 = smov %s1619_s21 }
 0x2b1   :  { %660 = vsyncpa [#allocation6], 1 }
 0x2b2   :  { %662 = vsyncpa [#allocation6 + $0x1], 1 }
 0x2b3   :  { %663 = vsyncpa [#allocation9], 1 }
 0x2b4   :  { %665 = vsyncpa [#allocation9 + $0x1], 1 }
 0x2b5   :  { %666 = vsyncpa [#allocation7], 1 }
 0x2b6   :  { %668 = vsyncpa [#allocation7 + $0x1], 1 }

</bundles_post_ra>
